<compile_context>
chip_gen: v6e
topology: v6e:2x2x1
jax: 0.10.0
libtpu: 0.0.40
codegen_flags: <defaults>
</compile_context>

<pallas_src>
import functools
import math

import jax
import jax.numpy as jnp
from jax.experimental import pallas as pl
from jax.experimental.pallas import tpu as pltpu

NUM_LAYERS = 4   # matches `num_layers = 4` in the PyTorch module
LANE = 128       # TPU lane width


def _round_up(x, m):
    return ((x + m - 1) // m) * m


def _choose_tile_b(batch):
    """Batch tile: multiple of 16 (bf16 sublane packing), capped at 4096 so the
    double-buffered in/out tiles stay small, with an even grid-step count
    (>=2, and >=4 once the batch is big enough) so v7x's two TensorCores get a
    balanced share of the 'parallel' batch axis."""
    b16 = _round_up(batch, 16)
    CAP = 4096
    if b16 <= 16:
        return b16                       # tiny batch: a single step is fine
    steps = max(2, -(-b16 // CAP))       # >=2 steps so both v7x TCs get work
    if b16 >= 1024:
        steps = max(steps, 4)            # >=4 steps -> better megacore balance
    if steps % 2:
        steps += 1                       # even step count
    return _round_up(-(-b16 // steps), 16)


def mlp_kernel(emb_ref, w0_ref, b0_ref, wh_ref, bh_ref, wl_ref, bl_ref, out_ref):
    """One batch tile of the full MLP forward.

    emb_ref : (TB, F)      bf16 flattened embeddings
    w0_ref  : (F, Hp)      bf16 self.W weight (transposed, lane-padded)
    b0_ref  : (1, Hp)      f32  self.W bias (lane-padded)
    wh_ref  : (L, Hp, Hp)  bf16 stacked hidden weights (transposed, padded)
    bh_ref  : (L, 1, Hp)   f32  stacked hidden biases (padded)
    wl_ref  : (Hp, Op)     bf16 self.logits weight (transposed, padded)
    bl_ref  : (1, Op)      f32  self.logits bias (padded)
    out_ref : (TB, Op)     f32  lane-dense logits output
    """
    x = emb_ref[...]  # bf16

    # layer = tanh(W(embed))   — bf16 MXU matmul, f32 accumulate, f32 tanh (EUP)
    h = jnp.tanh(
        jnp.dot(x, w0_ref[...], preferred_element_type=jnp.float32) + b0_ref[...]
    )

    # for hidden in self.hiddens: layer = tanh(hidden(layer))
    for i in range(NUM_LAYERS):  # static unroll, tiny fixed trip count
        h = jnp.tanh(
            jnp.dot(h.astype(jnp.bfloat16), wh_ref[i],
                    preferred_element_type=jnp.float32) + bh_ref[i]
        )

    # layer = self.logits(layer)   (no activation)
    out_ref[...] = (
        jnp.dot(h.astype(jnp.bfloat16), wl_ref[...],
                preferred_element_type=jnp.float32) + bl_ref[...]
    ).astype(out_ref.dtype)


@functools.partial(jax.jit, static_argnames=("tile_b",))
def mlp_forward(tokens, C, w0, b0, wh, bh, wl, bl, *, tile_b=None):
    """tokens: (B, size_input) int32 indices into embedding table C."""
    B, size_input = tokens.shape
    D = C.shape[1]
    F = size_input * D
    H = w0.shape[1]
    O = wl.shape[1]

    # ---- lane padding (exact: tanh(0)=0, zero rows/cols are inert), bf16 cast
    Hp = _round_up(H, LANE)
    Op = _round_up(O, LANE)
    f32, bf16 = jnp.float32, jnp.bfloat16
    w0p = jnp.zeros((F, Hp), f32).at[:, :H].set(w0).astype(bf16)
    b0p = jnp.zeros((1, Hp), f32).at[:, :H].set(b0)
    whp = jnp.zeros((NUM_LAYERS, Hp, Hp), f32).at[:, :H, :H].set(wh).astype(bf16)
    bhp = jnp.zeros((NUM_LAYERS, 1, Hp), f32).at[:, :, :H].set(bh)
    wlp = jnp.zeros((Hp, Op), f32).at[:H, :O].set(wl).astype(bf16)
    blp = jnp.zeros((1, Op), f32).at[:, :O].set(bl)

    # ---- batch tiling / padding
    if tile_b is None:
        tile_b = _choose_tile_b(B)
    pad_B = _round_up(B, tile_b)

    # Embedding lookup + flatten (glue, outside the kernel).  bf16 halves the
    # input HBM stream; F (=32) stays un-padded (full-array last dim is legal).
    embed = jnp.take(C, tokens, axis=0).reshape(B, F).astype(bf16)  # embed.view(B, -1)
    if pad_B != B:
        embed = jnp.pad(embed, ((0, pad_B - B), (0, 0)))  # zero rows, sliced off later

    grid = (pad_B // tile_b,)
    out_padded = pl.pallas_call(
        mlp_kernel,
        out_shape=jax.ShapeDtypeStruct((pad_B, Op), jnp.float32),
        grid_spec=pltpu.PrefetchScalarGridSpec(
            num_scalar_prefetch=0,
            grid=grid,
            in_specs=[
                pl.BlockSpec((tile_b, F), lambda i: (i, 0)),             # embeddings (batch-tiled)
                pl.BlockSpec((F, Hp), lambda i: (0, 0)),                 # W weight (resident)
                pl.BlockSpec((1, Hp), lambda i: (0, 0)),                 # W bias
                pl.BlockSpec((NUM_LAYERS, Hp, Hp), lambda i: (0, 0, 0)), # hidden weights
                pl.BlockSpec((NUM_LAYERS, 1, Hp), lambda i: (0, 0, 0)),  # hidden biases
                pl.BlockSpec((Hp, Op), lambda i: (0, 0)),                # logits weight
                pl.BlockSpec((1, Op), lambda i: (0, 0)),                 # logits bias
            ],
            out_specs=pl.BlockSpec((tile_b, Op), lambda i: (i, 0)),      # lane-dense output
        ),
        compiler_params=pltpu.CompilerParams(
            dimension_semantics=("parallel",),        # batch axis -> megacore-shardable
            vmem_limit_bytes=32 * 1024 * 1024,        # ample even at tile_b=4096
        ),
    )(embed, w0p, b0p, whp, bhp, wlp, blp)

    return out_padded[:B, :O]


def init_params(key, num_embeddings, size_dimension, size_input, size_hidden, size_output):
    """Deterministic parameter init mimicking the module's init_weights():
    kaiming_uniform_(nonlinearity='tanh') for weights, zeros for biases,
    standard normal for the embedding table."""
    keys = jax.random.split(key, 2 + NUM_LAYERS + 1)

    def kaiming_tanh_uniform(k, fan_in, fan_out):
        gain = 5.0 / 3.0                     # torch gain for tanh
        bound = gain * math.sqrt(3.0 / fan_in)
        # stored as (in, out) so the kernel can do x @ W
        return jax.random.uniform(k, (fan_in, fan_out), jnp.float32, -bound, bound)

    F = size_input * size_dimension
    C = jax.random.normal(keys[0], (num_embeddings, size_dimension), jnp.float32)
    w0 = kaiming_tanh_uniform(keys[1], F, size_hidden)
    b0 = jnp.zeros((1, size_hidden), jnp.float32)
    wh = jnp.stack(
        [kaiming_tanh_uniform(keys[2 + i], size_hidden, size_hidden)
         for i in range(NUM_LAYERS)], axis=0)
    bh = jnp.zeros((NUM_LAYERS, 1, size_hidden), jnp.float32)
    wl = kaiming_tanh_uniform(keys[2 + NUM_LAYERS], size_hidden, size_output)
    bl = jnp.zeros((1, size_output), jnp.float32)
    return C, w0, b0, wh, bh, wl, bl


def mlp_reference(tokens, C, w0, b0, wh, bh, wl, bl, matmul_dtype=jnp.float32):
    """Pure-JAX reference of the PyTorch forward.  With matmul_dtype=bf16 it
    mimics the kernel's bf16-operand / f32-accumulate matmuls exactly."""
    B = tokens.shape[0]

    def mm(a, w):
        return jnp.dot(a.astype(matmul_dtype), w.astype(matmul_dtype),
                       preferred_element_type=jnp.float32)

    h = jnp.take(C, tokens, axis=0).reshape(B, -1)
    h = jnp.tanh(mm(h, w0) + b0)
    for i in range(NUM_LAYERS):
        h = jnp.tanh(mm(h, wh[i]) + bh[i])
    return mm(h, wl) + bl


if __name__ == "__main__":
    # Small makemore-style config: vocab 27, 8-char context, 4-d embeddings,
    # hidden width 32, 27-way output logits.  batch=61 (not a multiple of the
    # tile) exercises batch padding, output lane-padding and a 2-step grid.
    num_embeddings = 27
    size_dimension = 4
    size_input = 8
    size_hidden = 32
    size_output = 27
    batch = 61

    key = jax.random.PRNGKey(0)
    pkey, tkey = jax.random.split(key)
    params = init_params(pkey, num_embeddings, size_dimension,
                         size_input, size_hidden, size_output)
    tokens = jax.random.randint(tkey, (batch, size_input), 0, num_embeddings,
                                dtype=jnp.int32)

    out = mlp_forward(tokens, *params)
    out = jax.block_until_ready(out)
    assert out.shape == (batch, size_output), out.shape

    # Tight check against a reference that uses the same bf16-operand /
    # f32-accumulate matmuls as the kernel ...
    ref_bf16 = mlp_reference(tokens, *params, matmul_dtype=jnp.bfloat16)
    err_bf16 = float(jnp.max(jnp.abs(out - ref_bf16)))
    assert jnp.allclose(out, ref_bf16, atol=2e-3, rtol=2e-3), err_bf16

    # ... plus a loose sanity check against the full-f32 PyTorch-equivalent
    # forward (bf16 operands over 6 layers => ~1e-2 relative error budget).
    ref_f32 = mlp_reference(tokens, *params)
    err_f32 = float(jnp.max(jnp.abs(out - ref_f32)))
    assert jnp.allclose(out, ref_f32, atol=5e-2, rtol=5e-2), err_f32

    print("KERNEL_OK")
</pallas_src>

<mosaic_0001>
module attributes {stable_mosaic.version = 11 : i64} {
  func.func @mlp_kernel(%arg0: i32, %arg1: memref<32x32xbf16, #tpu.memory_space<vmem>>, %arg2: memref<32x128xbf16, #tpu.memory_space<vmem>>, %arg3: memref<1x128xf32, #tpu.memory_space<vmem>>, %arg4: memref<4x128x128xbf16, #tpu.memory_space<vmem>>, %arg5: memref<4x1x128xf32, #tpu.memory_space<vmem>>, %arg6: memref<128x128xbf16, #tpu.memory_space<vmem>>, %arg7: memref<1x128xf32, #tpu.memory_space<vmem>>, %arg8: memref<32x128xf32, #tpu.memory_space<vmem>>) attributes {dimension_semantics = [#tpu.dimension_semantics<parallel>], iteration_bounds = array<i64: 2>, scalar_prefetch = 0 : i64, scratch_operands = 0 : i64, tpu.core_type = #tpu.core_type<tc>, window_params = [{transform_indices = @transform_0, window_bounds = array<i64: 32, 32>}, {pipeline_mode = #tpu.pipeline_mode<synchronous>, transform_indices = @transform_1, window_bounds = array<i64: 32, 128>}, {pipeline_mode = #tpu.pipeline_mode<synchronous>, transform_indices = @transform_2, window_bounds = array<i64: 1, 128>}, {pipeline_mode = #tpu.pipeline_mode<synchronous>, transform_indices = @transform_3, window_bounds = array<i64: 4, 128, 128>}, {pipeline_mode = #tpu.pipeline_mode<synchronous>, transform_indices = @transform_4, window_bounds = array<i64: 4, 1, 128>}, {pipeline_mode = #tpu.pipeline_mode<synchronous>, transform_indices = @transform_5, window_bounds = array<i64: 128, 128>}, {pipeline_mode = #tpu.pipeline_mode<synchronous>, transform_indices = @transform_6, window_bounds = array<i64: 1, 128>}, {transform_indices = @transform_7, window_bounds = array<i64: 32, 128>}]} {
    %c0 = arith.constant 0 : index
    %c0_0 = arith.constant 0 : index
    %0 = vector.load %arg1[%c0, %c0_0] : memref<32x32xbf16, #tpu.memory_space<vmem>>, vector<32x32xbf16>
    %c0_1 = arith.constant 0 : index
    %c0_2 = arith.constant 0 : index
    %1 = vector.load %arg2[%c0_1, %c0_2] : memref<32x128xbf16, #tpu.memory_space<vmem>>, vector<32x128xbf16>
    %cst = arith.constant dense<0.000000e+00> : vector<32x128xf32>
    %2 = tpu.matmul %0, %1, %cst {dimension_numbers = #tpu.dot_dimension_numbers<[1], [0], [0], [1], [0, 0, 1, 1], [], []>} : vector<32x32xbf16>, vector<32x128xbf16>, vector<32x128xf32> -> vector<32x128xf32>
    %c0_3 = arith.constant 0 : index
    %c0_4 = arith.constant 0 : index
    %3 = vector.load %arg3[%c0_3, %c0_4] : memref<1x128xf32, #tpu.memory_space<vmem>>, vector<1x128xf32>
    %4 = vector.broadcast %3 : vector<1x128xf32> to vector<32x128xf32>
    %5 = arith.addf %2, %4 : vector<32x128xf32>
    %6 = math.tanh %5 : vector<32x128xf32>
    %7 = arith.truncf %6 : vector<32x128xf32> to vector<32x128xbf16>
    %c0_5 = arith.constant 0 : index
    %c0_6 = arith.constant 0 : index
    %c0_7 = arith.constant 0 : index
    %8 = vector.load %arg4[%c0_5, %c0_6, %c0_7] : memref<4x128x128xbf16, #tpu.memory_space<vmem>>, vector<1x128x128xbf16>
    %9 = vector.shape_cast %8 : vector<1x128x128xbf16> to vector<128x128xbf16>
    %cst_8 = arith.constant dense<0.000000e+00> : vector<32x128xf32>
    %10 = tpu.matmul %7, %9, %cst_8 {dimension_numbers = #tpu.dot_dimension_numbers<[1], [0], [0], [1], [0, 0, 1, 1], [], []>} : vector<32x128xbf16>, vector<128x128xbf16>, vector<32x128xf32> -> vector<32x128xf32>
    %c0_9 = arith.constant 0 : index
    %c0_10 = arith.constant 0 : index
    %c0_11 = arith.constant 0 : index
    %11 = vector.load %arg5[%c0_9, %c0_10, %c0_11] : memref<4x1x128xf32, #tpu.memory_space<vmem>>, vector<1x1x128xf32>
    %12 = vector.shape_cast %11 : vector<1x1x128xf32> to vector<1x128xf32>
    %13 = vector.broadcast %12 : vector<1x128xf32> to vector<32x128xf32>
    %14 = arith.addf %10, %13 : vector<32x128xf32>
    %15 = math.tanh %14 : vector<32x128xf32>
    %16 = arith.truncf %15 : vector<32x128xf32> to vector<32x128xbf16>
    %c1 = arith.constant 1 : index
    %c0_12 = arith.constant 0 : index
    %c0_13 = arith.constant 0 : index
    %17 = vector.load %arg4[%c1, %c0_12, %c0_13] : memref<4x128x128xbf16, #tpu.memory_space<vmem>>, vector<1x128x128xbf16>
    %18 = vector.shape_cast %17 : vector<1x128x128xbf16> to vector<128x128xbf16>
    %cst_14 = arith.constant dense<0.000000e+00> : vector<32x128xf32>
    %19 = tpu.matmul %16, %18, %cst_14 {dimension_numbers = #tpu.dot_dimension_numbers<[1], [0], [0], [1], [0, 0, 1, 1], [], []>} : vector<32x128xbf16>, vector<128x128xbf16>, vector<32x128xf32> -> vector<32x128xf32>
    %c1_15 = arith.constant 1 : index
    %c0_16 = arith.constant 0 : index
    %c0_17 = arith.constant 0 : index
    %20 = vector.load %arg5[%c1_15, %c0_16, %c0_17] : memref<4x1x128xf32, #tpu.memory_space<vmem>>, vector<1x1x128xf32>
    %21 = vector.shape_cast %20 : vector<1x1x128xf32> to vector<1x128xf32>
    %22 = vector.broadcast %21 : vector<1x128xf32> to vector<32x128xf32>
    %23 = arith.addf %19, %22 : vector<32x128xf32>
    %24 = math.tanh %23 : vector<32x128xf32>
    %25 = arith.truncf %24 : vector<32x128xf32> to vector<32x128xbf16>
    %c2 = arith.constant 2 : index
    %c0_18 = arith.constant 0 : index
    %c0_19 = arith.constant 0 : index
    %26 = vector.load %arg4[%c2, %c0_18, %c0_19] : memref<4x128x128xbf16, #tpu.memory_space<vmem>>, vector<1x128x128xbf16>
    %27 = vector.shape_cast %26 : vector<1x128x128xbf16> to vector<128x128xbf16>
    %cst_20 = arith.constant dense<0.000000e+00> : vector<32x128xf32>
    %28 = tpu.matmul %25, %27, %cst_20 {dimension_numbers = #tpu.dot_dimension_numbers<[1], [0], [0], [1], [0, 0, 1, 1], [], []>} : vector<32x128xbf16>, vector<128x128xbf16>, vector<32x128xf32> -> vector<32x128xf32>
    %c2_21 = arith.constant 2 : index
    %c0_22 = arith.constant 0 : index
    %c0_23 = arith.constant 0 : index
    %29 = vector.load %arg5[%c2_21, %c0_22, %c0_23] : memref<4x1x128xf32, #tpu.memory_space<vmem>>, vector<1x1x128xf32>
    %30 = vector.shape_cast %29 : vector<1x1x128xf32> to vector<1x128xf32>
    %31 = vector.broadcast %30 : vector<1x128xf32> to vector<32x128xf32>
    %32 = arith.addf %28, %31 : vector<32x128xf32>
    %33 = math.tanh %32 : vector<32x128xf32>
    %34 = arith.truncf %33 : vector<32x128xf32> to vector<32x128xbf16>
    %c3 = arith.constant 3 : index
    %c0_24 = arith.constant 0 : index
    %c0_25 = arith.constant 0 : index
    %35 = vector.load %arg4[%c3, %c0_24, %c0_25] : memref<4x128x128xbf16, #tpu.memory_space<vmem>>, vector<1x128x128xbf16>
    %36 = vector.shape_cast %35 : vector<1x128x128xbf16> to vector<128x128xbf16>
    %cst_26 = arith.constant dense<0.000000e+00> : vector<32x128xf32>
    %37 = tpu.matmul %34, %36, %cst_26 {dimension_numbers = #tpu.dot_dimension_numbers<[1], [0], [0], [1], [0, 0, 1, 1], [], []>} : vector<32x128xbf16>, vector<128x128xbf16>, vector<32x128xf32> -> vector<32x128xf32>
    %c3_27 = arith.constant 3 : index
    %c0_28 = arith.constant 0 : index
    %c0_29 = arith.constant 0 : index
    %38 = vector.load %arg5[%c3_27, %c0_28, %c0_29] : memref<4x1x128xf32, #tpu.memory_space<vmem>>, vector<1x1x128xf32>
    %39 = vector.shape_cast %38 : vector<1x1x128xf32> to vector<1x128xf32>
    %40 = vector.broadcast %39 : vector<1x128xf32> to vector<32x128xf32>
    %41 = arith.addf %37, %40 : vector<32x128xf32>
    %42 = math.tanh %41 : vector<32x128xf32>
    %43 = arith.truncf %42 : vector<32x128xf32> to vector<32x128xbf16>
    %c0_30 = arith.constant 0 : index
    %c0_31 = arith.constant 0 : index
    %44 = vector.load %arg6[%c0_30, %c0_31] : memref<128x128xbf16, #tpu.memory_space<vmem>>, vector<128x128xbf16>
    %cst_32 = arith.constant dense<0.000000e+00> : vector<32x128xf32>
    %45 = tpu.matmul %43, %44, %cst_32 {dimension_numbers = #tpu.dot_dimension_numbers<[1], [0], [0], [1], [0, 0, 1, 1], [], []>} : vector<32x128xbf16>, vector<128x128xbf16>, vector<32x128xf32> -> vector<32x128xf32>
    %c0_33 = arith.constant 0 : index
    %c0_34 = arith.constant 0 : index
    %46 = vector.load %arg7[%c0_33, %c0_34] : memref<1x128xf32, #tpu.memory_space<vmem>>, vector<1x128xf32>
    %47 = vector.broadcast %46 : vector<1x128xf32> to vector<32x128xf32>
    %48 = arith.addf %45, %47 : vector<32x128xf32>
    %c0_35 = arith.constant 0 : index
    %c0_36 = arith.constant 0 : index
    %49 = vector.load %arg8[%c0_35, %c0_36] : memref<32x128xf32, #tpu.memory_space<vmem>>, vector<32x128xf32>
    tpu.vector_store %arg8[%c0_35, %c0_36], %48 {strides = array<i32>} : memref<32x128xf32, #tpu.memory_space<vmem>>, vector<32x128xf32>,
    return
  }
  func.func @transform_0(%arg0: i32) -> (i32, i32) {
    %c0_i32 = arith.constant 0 : i32
    %c0_i32_0 = arith.constant 0 : i32
    return %arg0, %c0_i32 : i32, i32
  }
  func.func @transform_1(%arg0: i32) -> (i32, i32) {
    %c0_i32 = arith.constant 0 : i32
    %c0_i32_0 = arith.constant 0 : i32
    %c0_i32_1 = arith.constant 0 : i32
    return %c0_i32, %c0_i32_0 : i32, i32
  }
  func.func @transform_2(%arg0: i32) -> (i32, i32) {
    %c0_i32 = arith.constant 0 : i32
    %c0_i32_0 = arith.constant 0 : i32
    %c0_i32_1 = arith.constant 0 : i32
    return %c0_i32, %c0_i32_0 : i32, i32
  }
  func.func @transform_3(%arg0: i32) -> (i32, i32, i32) {
    %c0_i32 = arith.constant 0 : i32
    %c0_i32_0 = arith.constant 0 : i32
    %c0_i32_1 = arith.constant 0 : i32
    %c0_i32_2 = arith.constant 0 : i32
    return %c0_i32, %c0_i32_0, %c0_i32_1 : i32, i32, i32
  }
  func.func @transform_4(%arg0: i32) -> (i32, i32, i32) {
    %c0_i32 = arith.constant 0 : i32
    %c0_i32_0 = arith.constant 0 : i32
    %c0_i32_1 = arith.constant 0 : i32
    %c0_i32_2 = arith.constant 0 : i32
    return %c0_i32, %c0_i32_0, %c0_i32_1 : i32, i32, i32
  }
  func.func @transform_5(%arg0: i32) -> (i32, i32) {
    %c0_i32 = arith.constant 0 : i32
    %c0_i32_0 = arith.constant 0 : i32
    %c0_i32_1 = arith.constant 0 : i32
    return %c0_i32, %c0_i32_0 : i32, i32
  }
  func.func @transform_6(%arg0: i32) -> (i32, i32) {
    %c0_i32 = arith.constant 0 : i32
    %c0_i32_0 = arith.constant 0 : i32
    %c0_i32_1 = arith.constant 0 : i32
    return %c0_i32, %c0_i32_0 : i32, i32
  }
  func.func @transform_7(%arg0: i32) -> (i32, i32) {
    %c0_i32 = arith.constant 0 : i32
    %c0_i32_0 = arith.constant 0 : i32
    return %arg0, %c0_i32 : i32, i32
  }
}

</mosaic_0001>

<bundles_post_ra>
// kernel: mlp_forward.1
= control target key start
LH: loop header
LB: loop body
LE: loop exit
PB: predicated region body
PF: predicated region fallthrough
CT: control target
= control target key end

     0   :  { %s1488_s24 = smov 0   ;;  %s1653_s0 = inlined_call_operand.vmem [shape: bf16[64,32], index: 0, kind: input, shape index: {}]   ;;  %s1654_s1 = inlined_call_operand.vmem [shape: bf16[32,128], index: 1, kind: input, shape index: {}]   ;;  %s1655_s2 = inlined_call_operand.vmem [shape: f32[1,128], index: 2, kind: input, shape index: {}]   ;;  %s1656_s3 = inlined_call_operand.vmem [shape: bf16[4,128,128], index: 3, kind: input, shape index: {}]   ;;  %s1657_s4 = inlined_call_operand.vmem [shape: f32[4,1,128], index: 4, kind: input, shape index: {}]   ;;  %s1658_s5 = inlined_call_operand.vmem [shape: bf16[128,128], index: 5, kind: input, shape index: {}]   ;;  %s1659_s6 = inlined_call_operand.vmem [shape: f32[1,128], index: 6, kind: input, shape index: {}]   ;;  %s1660_s7 = inlined_call_operand.vmem [shape: f32[64,128], index: 7, kind: output, shape index: {}]  }
   0x1 LB: > { %s1072_s25 = sadd.s32 4294967295, %s1446_s24   ;;  %p1076_p0 = scmp.ge.s32.totalorder %s1446_s24, 1  ;;  %s1446_s24 = sphi %s1488_s24, %s17_s24  }
   0x2   : > { %p238_p1 = scmp.lt.s32.totalorder %s1446_s24, 3 }
   0x4   : > { %p239_p2 = pnand %p1076_p0, %p238_p1 }
   0x5   : > { %s1077_s28 = sshll.u32 (!%p239_p2), %s1072_s25, 2 }
   0x6   : > { %242 = sbr.rel (%p239_p2) target bundleno = 1312 (0x520), region = 48  ;;  %p271_p3 = scmp.lt.s32.totalorder (!%p239_p2), %s1077_s28, 7 }
   0xb   : > { %v1356_v0 = vld [vmem:[%s1654_s1 + $0x8] sm:$0xff]   ;;  %v1357_v1 = vld [vmem:[%s1654_s1] sm:$0xff]   ;;  %v1360_v2 = vld [vmem:[%s1656_s3 + $0x38] sm:$0xff]   ;;  %s1662_s28 = smov (!%p271_p3, %s1077_s28), 7  ;;  %vm320_vm0 = vcmask 261120  }
   0xc   : > { %1240 = vmatprep.subr.bf16.mxu0 %v1356_v0  ;;  %v1361_v3 = vld [vmem:[%s1656_s3 + $0x30] sm:$0xff]   ;;  %1248 = vmatprep.subr.bf16.mxu1 %v1360_v2  ;;  %s1078_s12 = sshll.u32 %s1662_s28, 2  ;;  %v1362_v6 = vld [vmem:[%s1656_s3 + $0x28] sm:$0xff]   ;;  %v1363_v7 = vld [vmem:[%s1656_s3 + $0x20] sm:$0xff]   ;;  %s1080_s18 = sshll.u32 %s1662_s28, 3 }
   0xd   : > { %1241 = vmatpush3.bf16.msra.mxu0 %v1356_v0  ;;  %1249 = vmatpush3.bf16.msra.mxu1 %v1360_v2  ;;  %s274_s15 = scalar_lea.vmem %s1653_s0, %s1078_s12  ;;  %v1364_v8 = vld [vmem:[%s1656_s3 + $0x18] sm:$0xff]   ;;  %v1365_v9 = vld [vmem:[%s1656_s3 + $0x10] sm:$0xff]   ;;  %v1366_v10 = vld [vmem:[%s1656_s3 + $0x8] sm:$0xff]   ;;  %s280_s23 = scalar_lea.vmem %s1660_s7, %s1080_s18 }
   0xe   : > { %1242 = vmatprep.subr.bf16.mxu0 %v1357_v1  ;;  %1250 = vmatprep.subr.bf16.mxu1 %v1361_v3  ;;  %v1358_v4 = vld [vmem:[%s274_s15] sm:$0xff]   ;;  %v1359_v5 = vld [vmem:[%s274_s15 + $0x8] sm:$0xff]   ;;  %v1368_v12 = vld [vmem:[%s1656_s3 + $0x78] sm:$0xff]  }
   0xf   : > { %1244 = vmatprep.mubr.msk.bf16.mxu0 %vm320_vm0, %v1358_v4  ;;  %v1367_v11 = vld [vmem:[%s1656_s3] sm:$0xff]   ;;  %v1369_v13 = vld [vmem:[%s1656_s3 + $0x70] sm:$0xff]   ;;  %v1370_v29 = vld [vmem:[%s1656_s3 + $0x68] sm:$0xff]  }
  0x10   : > { %v1081_v15 = vld [vmem:[%s1655_s2] ss:$0 sm:$0xff]  ;;  %v1372_v31 = vld [vmem:[%s1656_s3 + $0x58] sm:$0xff]   ;;  %v1373_v32 = vld [vmem:[%s1656_s3 + $0x50] sm:$0xff]  }
  0x11   : > { %1243 = vmatpush3.bf16.msra.mxu0 %v1357_v1  ;;  %1251 = vmatpush3.bf16.msra.mxu1 %v1361_v3  ;;  %v1371_v30 = vld [vmem:[%s1656_s3 + $0x60] sm:$0xff]   ;;  %v1374_v33 = vld [vmem:[%s1656_s3 + $0x48] sm:$0xff]   ;;  %v1376_v35 = vld [vmem:[%s1656_s3 + $0xb8] sm:$0xff]  }
  0x12   : > { %1252 = vmatprep.subr.bf16.mxu1 %v1362_v6  ;;  %1268 = vmatprep.subr.bf16.mxu0 %v1368_v12  ;;  %v1375_v34 = vld [vmem:[%s1656_s3 + $0x40] sm:$0xff]   ;;  %v1377_v36 = vld [vmem:[%s1656_s3 + $0xb0] sm:$0xff]   ;;  %v1378_v52 = vld [vmem:[%s1656_s3 + $0xa8] sm:$0xff]  }
  0x13   : > { %v1088_v38 = vld [vmem:[%s1657_s4] ss:$0 sm:$0xff]  ;;  %v1380_v54 = vld [vmem:[%s1656_s3 + $0x98] sm:$0xff]   ;;  %v1381_v55 = vld [vmem:[%s1656_s3 + $0x90] sm:$0xff]  }
  0x14   : > { %1245 = vmatmul.mubr.msk.bf16.vlgmr.msra.gmra.mxu0 %vm320_vm0, %v1359_v5  ;;  %v1379_v53 = vld [vmem:[%s1656_s3 + $0xa0] sm:$0xff]   ;;  %v1382_v56 = vld [vmem:[%s1656_s3 + $0x88] sm:$0xff]   ;;  %v1384_v58 = vld [vmem:[%s1656_s3 + $0xf8] sm:$0xff]  }
  0x15   : > { %1253 = vmatpush3.bf16.msra.mxu1 %v1362_v6  ;;  %1269 = vmatpush3.bf16.msra.mxu0 %v1368_v12  ;;  %v1383_v57 = vld [vmem:[%s1656_s3 + $0x80] sm:$0xff]   ;;  %v1385_v59 = vld [vmem:[%s1656_s3 + $0xf0] sm:$0xff]  }
  0x16   : > { %1254 = vmatprep.subr.bf16.mxu1 %v1363_v7  ;;  %1270 = vmatprep.subr.bf16.mxu0 %v1369_v13  ;;  %v1114_v61 = vld [vmem:[%s1657_s4 + $0x1] ss:$0 sm:$0xff] }
  0x17   : > { %v1387_v12 = vld [vmem:[%s1656_s3 + $0xe0] sm:$0xff]  }
  0x19   : > { %1255 = vmatpush3.bf16.msra.mxu1 %v1363_v7  ;;  %1271 = vmatpush3.bf16.msra.mxu0 %v1369_v13  ;;  %v1388_v13 = vld [vmem:[%s1656_s3 + $0xd8] sm:$0xff]  }
  0x1a   : > { %1256 = vmatprep.subr.bf16.mxu1 %v1364_v8  ;;  %1272 = vmatprep.subr.bf16.mxu0 %v1370_v29 }
  0x1d   : > { %1257 = vmatpush3.bf16.msra.mxu1 %v1364_v8  ;;  %1273 = vmatpush3.bf16.msra.mxu0 %v1370_v29 }
  0x1e   : > { %1258 = vmatprep.subr.bf16.mxu1 %v1365_v9  ;;  %1274 = vmatprep.subr.bf16.mxu0 %v1371_v30 }
  0x21   : > { %1259 = vmatpush3.bf16.msra.mxu1 %v1365_v9  ;;  %1275 = vmatpush3.bf16.msra.mxu0 %v1371_v30 }
  0x22   : > { %1260 = vmatprep.subr.bf16.mxu1 %v1366_v10  ;;  %1276 = vmatprep.subr.bf16.mxu0 %v1372_v31 }
  0x25   : > { %1261 = vmatpush3.bf16.msra.mxu1 %v1366_v10  ;;  %1277 = vmatpush3.bf16.msra.mxu0 %v1372_v31 }
  0x26   : > { %1262 = vmatprep.subr.bf16.mxu1 %v1367_v11  ;;  %1278 = vmatprep.subr.bf16.mxu0 %v1373_v32 }
  0x29   : > { %1263 = vmatpush3.bf16.msra.mxu1 %v1367_v11  ;;  %1279 = vmatpush3.bf16.msra.mxu0 %v1373_v32  ;;  %v1386_v11 = vld [vmem:[%s1656_s3 + $0xe8] sm:$0xff]  }
  0x2a   : > { %1280 = vmatprep.subr.bf16.mxu0 %v1374_v33  ;;  %1288 = vmatprep.subr.bf16.mxu1 %v1376_v35 }
  0x2d   : > { %1281 = vmatpush3.bf16.msra.mxu0 %v1374_v33 }
  0x2e   : > { %1282 = vmatprep.subr.bf16.mxu0 %v1375_v34 }
  0x31   : > { %1283 = vmatpush3.bf16.msra.mxu0 %v1375_v34  ;;  %v1394_v34 = vld [vmem:[%s1658_s5 + $0x28] sm:$0xff]  }
  0x32   : > { %1308 = vmatprep.subr.bf16.mxu0 %v1384_v58 }
  0xd4   : > { %v1246_v14 = vpop.f32.mrf.mxu0 }
  0xd5   : > { %v370_v20 = vadd.f32 %v1246_v14, %v1081_v15  ;;  %v1389_v14 = vld [vmem:[%s1656_s3 + $0xd0] sm:$0xff]  }
  0xd6   : > { %v361_v16 = vpop.f32.mrf.mxu0 }
  0xd7   : > { %v362_v17 = vadd.f32 %v1081_v15, %v361_v16  ;;  %v1391_v16 = vld [vmem:[%s1656_s3 + $0xc0] sm:$0xff]  }
  0xd8   : > { %v1247_v18 = vpop.f32.mrf.mxu0 }
  0xd9   : > { %v373_v19 = vadd.f32 %v1247_v18, %v1081_v15  ;;  %1400 = vtanh.f32 %v362_v17  ;;  %v1392_v17 = vld [vmem:[%s1658_s5 + $0x38] sm:$0xff]   ;;  %v1393_v18 = vld [vmem:[%s1658_s5 + $0x30] sm:$0xff]  }
  0xda   : > { %v364_v21 = vpop.f32.mrf.mxu0 }
  0xdb   : > { %v365_v22 = vadd.f32 %v1081_v15, %v364_v21  ;;  %1402 = vtanh.f32 %v373_v19  ;;  %v1390_v15 = vld [vmem:[%s1656_s3 + $0xc8] sm:$0xff]  }
  0xdd   : > { %1404 = vtanh.f32 %v365_v22 }
  0xde   : > { %1406 = vtanh.f32 %v370_v20  ;;  %v1140_v20 = vld [vmem:[%s1657_s4 + $0x2] ss:$0 sm:$0xff] }
  0xe6   : > { %v1401_v23 = vpop.eup %1400 }
  0xe8   : > { %v1403_v24 = vpop.eup %1402 }
  0xea   : > { %v1405_v25 = vpop.eup %1404 }
  0xeb   : > { %v1407_v26 = vpop.eup %1406  ;;  %v380_v27 = vpack.c.bf16 %v1405_v25, %v1401_v23 }
  0xec   : > { %v381_v28 = vpack.c.bf16 %v1403_v24, %v1407_v26 }
  0xed   : > { %1264 = vmatprep.mubr.bf16.mxu1 %v380_v27 }
  0xee   : > { %1265 = vmatmul.mubr.bf16.vlgmr.msra.gmra.mxu1 %v381_v28 }
  0xef   : > { %1289 = vmatpush3.bf16.msra.mxu1 %v1376_v35  ;;  %v1395_v35 = vld [vmem:[%s1658_s5 + $0x20] sm:$0xff]  }
  0xf0   : > { %1290 = vmatprep.subr.bf16.mxu1 %v1377_v36 }
  0xf3   : > { %1291 = vmatpush3.bf16.msra.mxu1 %v1377_v36  ;;  %v1396_v36 = vld [vmem:[%s1658_s5 + $0x18] sm:$0xff]  }
  0xf4   : > { %1292 = vmatprep.subr.bf16.mxu1 %v1378_v52 }
  0xf7   : > { %1293 = vmatpush3.bf16.msra.mxu1 %v1378_v52 }
  0xf8   : > { %1294 = vmatprep.subr.bf16.mxu1 %v1379_v53 }
  0xfb   : > { %1295 = vmatpush3.bf16.msra.mxu1 %v1379_v53 }
  0xfc   : > { %1296 = vmatprep.subr.bf16.mxu1 %v1380_v54 }
  0xff   : > { %1297 = vmatpush3.bf16.msra.mxu1 %v1380_v54 }
 0x100   : > { %1298 = vmatprep.subr.bf16.mxu1 %v1381_v55 }
 0x103   : > { %1299 = vmatpush3.bf16.msra.mxu1 %v1381_v55 }
 0x104   : > { %1300 = vmatprep.subr.bf16.mxu1 %v1382_v56 }
 0x107   : > { %1301 = vmatpush3.bf16.msra.mxu1 %v1382_v56  ;;  %v1175_v56 = vld [vmem:[%s1659_s6] ss:$0 sm:$0xff] }
 0x108   : > { %1302 = vmatprep.subr.bf16.mxu1 %v1383_v57 }
 0x10b   : > { %1303 = vmatpush3.bf16.msra.mxu1 %v1383_v57 }
 0x10c   : > { %1328 = vmatprep.subr.bf16.mxu1 %v1392_v17 }
 0x1ae   : > { %v1266_v37 = vpop.f32.mrf.mxu1 }
 0x1af   : > { %v496_v43 = vadd.f32 %v1266_v37, %v1088_v38  ;;  %v1397_v37 = vld [vmem:[%s1658_s5 + $0x10] sm:$0xff]  }
 0x1b0   : > { %v487_v39 = vpop.f32.mrf.mxu1 }
 0x1b1   : > { %v488_v40 = vadd.f32 %v1088_v38, %v487_v39  ;;  %v1399_v39 = vld [vmem:[%s1658_s5] sm:$0xff]  }
 0x1b2   : > { %v1267_v41 = vpop.f32.mrf.mxu1 }
 0x1b3   : > { %v499_v42 = vadd.f32 %v1267_v41, %v1088_v38  ;;  %1408 = vtanh.f32 %v488_v40  ;;  %v1166_v41 = vld [vmem:[%s1657_s4 + $0x3] ss:$0 sm:$0xff] }
 0x1b4   : > { %v490_v44 = vpop.f32.mrf.mxu1 }
 0x1b5   : > { %v491_v45 = vadd.f32 %v1088_v38, %v490_v44  ;;  %1410 = vtanh.f32 %v499_v42  ;;  %v1398_v38 = vld [vmem:[%s1658_s5 + $0x8] sm:$0xff]  }
 0x1b7   : > { %1412 = vtanh.f32 %v491_v45 }
 0x1b8   : > { %1414 = vtanh.f32 %v496_v43 }
 0x1c0   : > { %v1409_v46 = vpop.eup %1408 }
 0x1c2   : > { %v1411_v47 = vpop.eup %1410 }
 0x1c4   : > { %v1413_v48 = vpop.eup %1412 }
 0x1c5   : > { %v1415_v49 = vpop.eup %1414  ;;  %v506_v50 = vpack.c.bf16 %v1413_v48, %v1409_v46 }
 0x1c6   : > { %v507_v51 = vpack.c.bf16 %v1411_v47, %v1415_v49 }
 0x1c7   : > { %1284 = vmatprep.mubr.bf16.mxu0 %v506_v50 }
 0x1c8   : > { %1285 = vmatmul.mubr.bf16.vlgmr.msra.gmra.mxu0 %v507_v51 }
 0x1c9   : > { %1309 = vmatpush3.bf16.msra.mxu0 %v1384_v58 }
 0x1ca   : > { %1310 = vmatprep.subr.bf16.mxu0 %v1385_v59 }
 0x1cd   : > { %1311 = vmatpush3.bf16.msra.mxu0 %v1385_v59 }
 0x1ce   : > { %1312 = vmatprep.subr.bf16.mxu0 %v1386_v11 }
 0x1d1   : > { %1313 = vmatpush3.bf16.msra.mxu0 %v1386_v11 }
 0x1d2   : > { %1314 = vmatprep.subr.bf16.mxu0 %v1387_v12 }
 0x1d5   : > { %1315 = vmatpush3.bf16.msra.mxu0 %v1387_v12 }
 0x1d6   : > { %1316 = vmatprep.subr.bf16.mxu0 %v1388_v13 }
 0x1d9   : > { %1317 = vmatpush3.bf16.msra.mxu0 %v1388_v13 }
 0x1da   : > { %1318 = vmatprep.subr.bf16.mxu0 %v1389_v14 }
 0x1dd   : > { %1319 = vmatpush3.bf16.msra.mxu0 %v1389_v14 }
 0x1de   : > { %1320 = vmatprep.subr.bf16.mxu0 %v1390_v15 }
 0x1e1   : > { %1321 = vmatpush3.bf16.msra.mxu0 %v1390_v15 }
 0x1e2   : > { %1322 = vmatprep.subr.bf16.mxu0 %v1391_v16 }
 0x1e5   : > { %1323 = vmatpush3.bf16.msra.mxu0 %v1391_v16 }
 0x288   : > { %v1286_v60 = vpop.f32.mrf.mxu0 }
 0x289   : > { %v624_v2 = vadd.f32 %v1286_v60, %v1114_v61 }
 0x28a   : > { %v615_v62 = vpop.f32.mrf.mxu0 }
 0x28b   : > { %v616_v63 = vadd.f32 %v1114_v61, %v615_v62 }
 0x28c   : > { %v1287_v0 = vpop.f32.mrf.mxu0 }
 0x28d   : > { %v627_v1 = vadd.f32 %v1287_v0, %v1114_v61  ;;  %1416 = vtanh.f32 %v616_v63 }
 0x28e   : > { %v618_v3 = vpop.f32.mrf.mxu0 }
 0x28f   : > { %v619_v4 = vadd.f32 %v1114_v61, %v618_v3  ;;  %1418 = vtanh.f32 %v627_v1 }
 0x291   : > { %1420 = vtanh.f32 %v619_v4 }
 0x292   : > { %1422 = vtanh.f32 %v624_v2 }
 0x29a   : > { %v1417_v5 = vpop.eup %1416 }
 0x29c   : > { %v1419_v6 = vpop.eup %1418 }
 0x29e   : > { %v1421_v7 = vpop.eup %1420 }
 0x29f   : > { %v1423_v8 = vpop.eup %1422  ;;  %v634_v9 = vpack.c.bf16 %v1421_v7, %v1417_v5 }
 0x2a0   : > { %v635_v10 = vpack.c.bf16 %v1419_v6, %v1423_v8 }
 0x2a1   : > { %1304 = vmatprep.mubr.bf16.mxu1 %v634_v9 }
 0x2a2   : > { %1305 = vmatmul.mubr.bf16.vlgmr.msra.gmra.mxu1 %v635_v10 }
 0x2a3   : > { %1329 = vmatpush3.bf16.msra.mxu1 %v1392_v17 }
 0x2a4   : > { %1330 = vmatprep.subr.bf16.mxu1 %v1393_v18 }
 0x2a7   : > { %1331 = vmatpush3.bf16.msra.mxu1 %v1393_v18 }
 0x2a8   : > { %1332 = vmatprep.subr.bf16.mxu1 %v1394_v34 }
 0x2ab   : > { %1333 = vmatpush3.bf16.msra.mxu1 %v1394_v34 }
 0x2ac   : > { %1334 = vmatprep.subr.bf16.mxu1 %v1395_v35 }
 0x2af   : > { %1335 = vmatpush3.bf16.msra.mxu1 %v1395_v35 }
 0x2b0   : > { %1336 = vmatprep.subr.bf16.mxu1 %v1396_v36 }
 0x2b3   : > { %1337 = vmatpush3.bf16.msra.mxu1 %v1396_v36 }
 0x2b4   : > { %1338 = vmatprep.subr.bf16.mxu1 %v1397_v37 }
 0x2b7   : > { %1339 = vmatpush3.bf16.msra.mxu1 %v1397_v37 }
 0x2b8   : > { %1340 = vmatprep.subr.bf16.mxu1 %v1398_v38 }
 0x2bb   : > { %1341 = vmatpush3.bf16.msra.mxu1 %v1398_v38 }
 0x2bc   : > { %1342 = vmatprep.subr.bf16.mxu1 %v1399_v39 }
 0x2bf   : > { %1343 = vmatpush3.bf16.msra.mxu1 %v1399_v39 }
 0x362   : > { %v1306_v19 = vpop.f32.mrf.mxu1 }
 0x363   : > { %v752_v25 = vadd.f32 %v1306_v19, %v1140_v20 }
 0x364   : > { %v743_v21 = vpop.f32.mrf.mxu1 }
 0x365   : > { %v744_v22 = vadd.f32 %v1140_v20, %v743_v21 }
 0x366   : > { %v1307_v23 = vpop.f32.mrf.mxu1 }
 0x367   : > { %v755_v24 = vadd.f32 %v1307_v23, %v1140_v20  ;;  %1424 = vtanh.f32 %v744_v22 }
 0x368   : > { %v746_v26 = vpop.f32.mrf.mxu1 }
 0x369   : > { %v747_v27 = vadd.f32 %v1140_v20, %v746_v26  ;;  %1426 = vtanh.f32 %v755_v24 }
 0x36b   : > { %1428 = vtanh.f32 %v747_v27 }
 0x36c   : > { %1430 = vtanh.f32 %v752_v25 }
 0x374   : > { %v1425_v28 = vpop.eup %1424 }
 0x376   : > { %v1427_v29 = vpop.eup %1426 }
 0x378   : > { %v1429_v30 = vpop.eup %1428 }
 0x379   : > { %v1431_v31 = vpop.eup %1430  ;;  %v762_v32 = vpack.c.bf16 %v1429_v30, %v1425_v28 }
 0x37a   : > { %v763_v33 = vpack.c.bf16 %v1427_v29, %v1431_v31 }
 0x37b   : > { %1324 = vmatprep.mubr.bf16.mxu0 %v762_v32 }
 0x37c   : > { %1325 = vmatmul.mubr.bf16.vlgmr.msra.gmra.mxu0 %v763_v33 }
 0x43c   : > { %v1326_v40 = vpop.f32.mrf.mxu0 }
 0x43d   : > { %v880_v46 = vadd.f32 %v1326_v40, %v1166_v41 }
 0x43e   : > { %v871_v42 = vpop.f32.mrf.mxu0 }
 0x43f   : > { %v872_v43 = vadd.f32 %v1166_v41, %v871_v42 }
 0x440   : > { %v1327_v44 = vpop.f32.mrf.mxu0 }
 0x441   : > { %v883_v45 = vadd.f32 %v1327_v44, %v1166_v41  ;;  %1432 = vtanh.f32 %v872_v43 }
 0x442   : > { %v874_v47 = vpop.f32.mrf.mxu0 }
 0x443   : > { %v875_v48 = vadd.f32 %v1166_v41, %v874_v47  ;;  %1434 = vtanh.f32 %v883_v45 }
 0x445   : > { %1436 = vtanh.f32 %v875_v48 }
 0x446   : > { %1438 = vtanh.f32 %v880_v46 }
 0x44e   : > { %v1433_v49 = vpop.eup %1432 }
 0x450   : > { %v1435_v50 = vpop.eup %1434 }
 0x452   : > { %v1437_v51 = vpop.eup %1436 }
 0x453   : > { %v1439_v52 = vpop.eup %1438  ;;  %v890_v53 = vpack.c.bf16 %v1437_v51, %v1433_v49 }
 0x454   : > { %v891_v54 = vpack.c.bf16 %v1435_v50, %v1439_v52 }
 0x455   : > { %1344 = vmatprep.mubr.bf16.mxu1 %v890_v53 }
 0x456   : > { %1345 = vmatmul.mubr.bf16.vlgmr.msra.gmra.mxu1 %v891_v54 }
 0x516   : > { %v1346_v55 = vpop.f32.mrf.mxu1 }
 0x517   : > { %v1006_v62 = vadd.f32 %v1346_v55, %v1175_v56 }
 0x518   : > { %v997_v57 = vpop.f32.mrf.mxu1 }
 0x519   : > { %v998_v58 = vadd.f32 %v1175_v56, %v997_v57  ;;  %1014 = vst [vmem:[%s280_s23 + $0x10] sm:$0xff] %v1006_v62 }
 0x51a   : > { %v1347_v59 = vpop.f32.mrf.mxu1 }
 0x51b   : > { %1012 = vst [vmem:[%s280_s23] sm:$0xff] %v998_v58  ;;  %v1009_v63 = vadd.f32 %v1347_v59, %v1175_v56 }
 0x51c   : > { %v1000_v60 = vpop.f32.mrf.mxu1 }
 0x51d   : > { %v1001_v61 = vadd.f32 %v1175_v56, %v1000_v60  ;;  %1015 = vst [vmem:[%s280_s23 + $0x18] sm:$0xff] %v1009_v63 }
 0x51f   : > { %1013 = vst [vmem:[%s280_s23 + $0x8] sm:$0xff] %v1001_v61 }
 0x520 PF: > { %s17_s24 = sadd.s32 1, %s1446_s24  }
 0x521   : > { %p14_p4 = scmp.ge.s32.totalorder %s17_s24, 4  }
 0x523   :  { %16 = sbr.rel (!%p14_p4) target bundleno = 1 (0x1), region = 84 }

</bundles_post_ra>
